<compile_context>
chip_gen: v7x
topology: tpu7x:2x2x1
jax: 0.10.0
libtpu: 0.0.40
codegen_flags: <defaults>
</compile_context>

<pallas_src>
import functools

import jax
import jax.numpy as jnp
from jax.experimental import pallas as pl
from jax.experimental.pallas import tpu as pltpu


def _round_up(x, m):
    return (x + m - 1) // m * m


def _nt_xent_kernel(left_ref, pos_ref, right_ref, loss_ref,
                    m_ref, l_ref, p_ref, *,
                    batch_size, n_real, inv_temp):
    # left_ref : (TR, D)  row tile of cat(emb1, emb2)          (resident over j)
    # pos_ref  : (TR, D)  row tile of cat(emb2, emb1)          (positive partners)
    # right_ref: (TC, D)  column tile of cat(emb1, emb2[,emb_m]) (streamed)
    # loss_ref : (TR, 1)  per-row loss, written on the last column step
    # scratch  : m_ref/l_ref (online LSE state), p_ref (positive logits)
    j = pl.program_id(1)
    n_j = pl.num_programs(1)

    # Fold 1/temperature into the (TR, D) row operand (cheaper than scaling the
    # (TR, TC) sim tile whenever D <= TC); keep the native dtype so bf16 inputs
    # feed the MXU directly with f32 accumulation.
    left = left_ref[...]
    left_scaled = left * jnp.asarray(inv_temp, dtype=left.dtype)

    @pl.when(j == 0)
    def _init():
        m_ref[...] = jnp.full(m_ref.shape, -jnp.inf, jnp.float32)
        l_ref[...] = jnp.zeros(l_ref.shape, jnp.float32)
        # Positive term: left[i] . right[label_i] / temperature, where
        # right[label_i] == pos[i].  Computed once per row tile instead of
        # gathering it out of the sim matrix.
        p_ref[...] = jnp.sum(
            left_scaled.astype(jnp.float32) * pos_ref[...].astype(jnp.float32),
            axis=-1, keepdims=True)

    # (TR, TC) similarity tile on the MXU, contracting the shared last (lane)
    # dim -- no transpose / relayout of `right`, f32 accumulation.
    sim = jax.lax.dot_general(
        left_scaled, right_ref[...],
        dimension_numbers=(((1,), (1,)), ((), ())),
        preferred_element_type=jnp.float32)

    tr, tc = sim.shape
    row0 = pl.program_id(0) * tr
    col0 = j * tc
    r = row0 + jax.lax.broadcasted_iota(jnp.int32, sim.shape, 0)
    c = col0 + jax.lax.broadcasted_iota(jnp.int32, sim.shape, 1)
    two_b = 2 * batch_size
    # Diagonal mask (only over the first 2B columns), plus mask padded columns
    # so they do not contribute to the log-sum-exp.
    masked = ((r == c) & (c < two_b)) | (c >= n_real)
    sim = jnp.where(masked, jnp.float32(-1e9), sim)

    # Online (flash-style) log-sum-exp accumulation over column tiles.
    m_prev = m_ref[...]
    m_new = jnp.maximum(m_prev, jnp.max(sim, axis=-1, keepdims=True))
    alpha = jnp.exp(m_prev - m_new)
    l_ref[...] = alpha * l_ref[...] + jnp.sum(jnp.exp(sim - m_new),
                                              axis=-1, keepdims=True)
    m_ref[...] = m_new

    @pl.when(j == n_j - 1)
    def _finalize():
        lse = m_ref[...] + jnp.log(l_ref[...])
        loss_ref[...] = lse - p_ref[...]


def nt_xent_loss(emb1, emb2, emb_m=None, *, temperature=1.0,
                 row_tile=None, col_tile=None):
    """Pallas implementation of NT_Xent.forward (reduction='mean')."""
    batch_size, d = emb1.shape
    two_b = 2 * batch_size

    emb = jnp.concatenate([emb1, emb2], axis=0)    # left rows  (2B, D)
    pos = jnp.concatenate([emb2, emb1], axis=0)    # positive partner per row
    right = emb if emb_m is None else jnp.concatenate([emb, emb_m], axis=0)
    n = right.shape[0]

    # Tile sizes: rows multiple of 8 (sublanes), columns multiple of 128 (lanes).
    if row_tile is None:
        row_tile = min(256, _round_up(two_b, 8))
    if col_tile is None:
        col_tile = min(512, _round_up(n, 128))
    rows_pad = _round_up(two_b, row_tile)
    cols_pad = _round_up(n, col_tile)

    if rows_pad != two_b:
        emb = jnp.pad(emb, ((0, rows_pad - two_b), (0, 0)))
        pos = jnp.pad(pos, ((0, rows_pad - two_b), (0, 0)))
    if cols_pad != n:
        right = jnp.pad(right, ((0, cols_pad - n), (0, 0)))

    grid = (rows_pad // row_tile, cols_pad // col_tile)

    # Explicit scoped-VMEM budget sized to the tiles (double-buffered inputs +
    # sim/exp temporaries), clamped to stay valid on every generation
    # (v7x physical VMEM is 64 MiB).
    itemsize = jnp.dtype(emb.dtype).itemsize
    est = (2 * (2 * row_tile * d + col_tile * d) * itemsize   # dbl-buffered inputs
           + 2 * row_tile * 4                                 # dbl-buffered output
           + 6 * row_tile * col_tile * 4                      # sim / exp / iota temps
           + 4 * row_tile * 4)                                # scratch
    vmem_limit = int(min(64 * 2**20, max(2 * est, 32 * 2**20)))

    kernel = functools.partial(
        _nt_xent_kernel,
        batch_size=batch_size,
        n_real=n,
        inv_temp=float(1.0 / temperature),
    )

    per_row = pl.pallas_call(
        kernel,
        out_shape=jax.ShapeDtypeStruct((rows_pad, 1), jnp.float32),
        grid_spec=pltpu.PrefetchScalarGridSpec(
            num_scalar_prefetch=0,
            grid=grid,
            in_specs=[
                pl.BlockSpec((row_tile, d), lambda i, j: (i, 0)),   # left rows
                pl.BlockSpec((row_tile, d), lambda i, j: (i, 0)),   # positives
                pl.BlockSpec((col_tile, d), lambda i, j: (j, 0)),   # right cols
            ],
            out_specs=pl.BlockSpec((row_tile, 1), lambda i, j: (i, 0)),
            scratch_shapes=[
                pltpu.VMEM((row_tile, 1), jnp.float32),   # m (running max)
                pltpu.VMEM((row_tile, 1), jnp.float32),   # l (running sum-exp)
                pltpu.VMEM((row_tile, 1), jnp.float32),   # positive logits
            ],
        ),
        compiler_params=pltpu.CompilerParams(
            dimension_semantics=("parallel", "arbitrary"),
            vmem_limit_bytes=vmem_limit,
        ),
    )(emb, pos, right)

    # reduction='mean' over the 2B real rows (padded rows sliced off).
    return jnp.sum(per_row[:two_b, 0]) / jnp.float32(two_b)


def _reference_loss(emb1, emb2, emb_m=None, temperature=1.0):
    # Pure-JAX reference mirroring the PyTorch module, for sanity checking.
    b = emb1.shape[0]
    left = jnp.concatenate([emb1, emb2], axis=0)
    right = left if emb_m is None else jnp.concatenate([emb1, emb2, emb_m], axis=0)
    sim = (left @ right.T) / temperature
    eye = jnp.eye(2 * b, dtype=bool)
    sim = sim.at[:2 * b, :2 * b].set(
        jnp.where(eye, -1e9, sim[:2 * b, :2 * b]))
    labels = jnp.concatenate([jnp.arange(b, 2 * b), jnp.arange(b)])
    logp = jax.nn.log_softmax(sim, axis=-1)
    return -jnp.mean(logp[jnp.arange(2 * b), labels])


if __name__ == "__main__":
    key = jax.random.PRNGKey(0)
    k1, k2, k3 = jax.random.split(key, 3)
    B, D = 4, 32
    emb1 = jax.random.normal(k1, (B, D), dtype=jnp.float32)
    emb2 = jax.random.normal(k2, (B, D), dtype=jnp.float32)
    emb_m = jax.random.normal(k3, (2, D), dtype=jnp.float32)

    # emb_m=None path
    loss = nt_xent_loss(emb1, emb2, temperature=0.5)
    jax.block_until_ready(loss)
    ref = _reference_loss(emb1, emb2, temperature=0.5)
    assert jnp.allclose(loss, ref, rtol=1e-5, atol=1e-5), (loss, ref)

    # emb_m path (extra negatives)
    loss_m = nt_xent_loss(emb1, emb2, emb_m, temperature=0.5)
    jax.block_until_ready(loss_m)
    ref_m = _reference_loss(emb1, emb2, emb_m, temperature=0.5)
    assert jnp.allclose(loss_m, ref_m, rtol=1e-5, atol=1e-5), (loss_m, ref_m)

    print("KERNEL_OK")
</pallas_src>

<mosaic_0001>
module attributes {stable_mosaic.version = 11 : i64} {
  func.func @_nt_xent_kernel(%arg0: i32, %arg1: i32, %arg2: memref<8x32xf32, #tpu.memory_space<vmem>>, %arg3: memref<8x32xf32, #tpu.memory_space<vmem>>, %arg4: memref<128x32xf32, #tpu.memory_space<vmem>>, %arg5: memref<8x1xf32, #tpu.memory_space<vmem>>, %arg6: memref<8x1xf32, #tpu.memory_space<vmem>>, %arg7: memref<8x1xf32, #tpu.memory_space<vmem>>, %arg8: memref<8x1xf32, #tpu.memory_space<vmem>>) attributes {dimension_semantics = [#tpu.dimension_semantics<parallel>, #tpu.dimension_semantics<arbitrary>], iteration_bounds = array<i64: 1, 1>, scalar_prefetch = 0 : i64, scratch_operands = 3 : i64, tpu.core_type = #tpu.core_type<tc>, window_params = [{transform_indices = @transform_0, window_bounds = array<i64: 8, 32>}, {transform_indices = @transform_1, window_bounds = array<i64: 8, 32>}, {transform_indices = @transform_2, window_bounds = array<i64: 128, 32>}, {transform_indices = @transform_3, window_bounds = array<i64: 8, 1>}]} {
    %c0 = arith.constant 0 : index
    %c0_0 = arith.constant 0 : index
    %0 = vector.load %arg2[%c0, %c0_0] : memref<8x32xf32, #tpu.memory_space<vmem>>, vector<8x32xf32>
    %cst = arith.constant 2.000000e+00 : f32
    %1 = vector.broadcast %cst : f32 to vector<8x32xf32>
    %2 = arith.mulf %0, %1 : vector<8x32xf32>
    %c0_i32 = arith.constant 0 : i32
    %3 = arith.cmpi eq, %arg1, %c0_i32 : i32
    %4 = arith.extui %3 : i1 to i32
    %c0_i32_1 = arith.constant 0 : i32
    %5 = arith.cmpi ne, %4, %c0_i32_1 : i32
    scf.if %5 {
      %cst_20 = arith.constant 0xFF800000 : f32
      %44 = vector.broadcast %cst_20 : f32 to vector<8x1xf32>
      %c0_21 = arith.constant 0 : index
      %c0_22 = arith.constant 0 : index
      %45 = vector.load %arg6[%c0_21, %c0_22] : memref<8x1xf32, #tpu.memory_space<vmem>>, vector<8x1xf32>
      tpu.vector_store %arg6[%c0_21, %c0_22], %44 {strides = array<i32>} : memref<8x1xf32, #tpu.memory_space<vmem>>, vector<8x1xf32>,
      %cst_23 = arith.constant 0.000000e+00 : f32
      %46 = vector.broadcast %cst_23 : f32 to vector<8x1xf32>
      %c0_24 = arith.constant 0 : index
      %c0_25 = arith.constant 0 : index
      %47 = vector.load %arg7[%c0_24, %c0_25] : memref<8x1xf32, #tpu.memory_space<vmem>>, vector<8x1xf32>
      tpu.vector_store %arg7[%c0_24, %c0_25], %46 {strides = array<i32>} : memref<8x1xf32, #tpu.memory_space<vmem>>, vector<8x1xf32>,
      %c0_26 = arith.constant 0 : index
      %c0_27 = arith.constant 0 : index
      %48 = vector.load %arg3[%c0_26, %c0_27] : memref<8x32xf32, #tpu.memory_space<vmem>>, vector<8x32xf32>
      %49 = arith.mulf %2, %48 : vector<8x32xf32>
      %cst_28 = arith.constant dense<0.000000e+00> : vector<8xf32>
      %50 = vector.multi_reduction <add>, %49, %cst_28 [1] : vector<8x32xf32> to vector<8xf32>
      %51 = vector.shape_cast %50 : vector<8xf32> to vector<8x1xf32>
      %c0_29 = arith.constant 0 : index
      %c0_30 = arith.constant 0 : index
      %52 = vector.load %arg8[%c0_29, %c0_30] : memref<8x1xf32, #tpu.memory_space<vmem>>, vector<8x1xf32>
      tpu.vector_store %arg8[%c0_29, %c0_30], %51 {strides = array<i32>} : memref<8x1xf32, #tpu.memory_space<vmem>>, vector<8x1xf32>,
    } else {
    }
    %c0_2 = arith.constant 0 : index
    %c0_3 = arith.constant 0 : index
    %6 = vector.load %arg4[%c0_2, %c0_3] : memref<128x32xf32, #tpu.memory_space<vmem>>, vector<128x32xf32>
    %cst_4 = arith.constant dense<0.000000e+00> : vector<8x128xf32>
    %7 = tpu.matmul %2, %6, %cst_4 {dimension_numbers = #tpu.dot_dimension_numbers<[1], [1], [0], [0], [0, 0, 1, 0], [], []>} : vector<8x32xf32>, vector<128x32xf32>, vector<8x128xf32> -> vector<8x128xf32>
    %c8_i32 = arith.constant 8 : i32
    %8 = arith.muli %arg0, %c8_i32 : i32
    %c128_i32 = arith.constant 128 : i32
    %9 = arith.muli %arg1, %c128_i32 : i32
    %10 = tpu.iota {dimensions = array<i32: 0>} : vector<8x128xi32>
    %11 = vector.broadcast %8 : i32 to vector<8x128xi32>
    %12 = arith.addi %11, %10 : vector<8x128xi32>
    %13 = tpu.iota {dimensions = array<i32: 1>} : vector<8x128xi32>
    %14 = vector.broadcast %9 : i32 to vector<8x128xi32>
    %15 = arith.addi %14, %13 : vector<8x128xi32>
    %16 = arith.cmpi eq, %12, %15 : vector<8x128xi32>
    %c8_i32_5 = arith.constant 8 : i32
    %17 = vector.broadcast %c8_i32_5 : i32 to vector<8x128xi32>
    %18 = arith.cmpi slt, %15, %17 : vector<8x128xi32>
    %19 = arith.andi %16, %18 : vector<8x128xi1>
    %c8_i32_6 = arith.constant 8 : i32
    %20 = vector.broadcast %c8_i32_6 : i32 to vector<8x128xi32>
    %21 = arith.cmpi sge, %15, %20 : vector<8x128xi32>
    %22 = arith.ori %19, %21 : vector<8x128xi1>
    %cst_7 = arith.constant -1.000000e+09 : f32
    %23 = vector.broadcast %cst_7 : f32 to vector<8x128xf32>
    %24 = arith.select %22, %23, %7 : vector<8x128xi1>, vector<8x128xf32>
    %c0_8 = arith.constant 0 : index
    %c0_9 = arith.constant 0 : index
    %25 = vector.load %arg6[%c0_8, %c0_9] : memref<8x1xf32, #tpu.memory_space<vmem>>, vector<8x1xf32>
    %cst_10 = arith.constant dense<0xFF800000> : vector<8xf32>
    %26 = vector.multi_reduction <maximumf>, %24, %cst_10 [1] : vector<8x128xf32> to vector<8xf32>
    %27 = vector.shape_cast %26 : vector<8xf32> to vector<8x1xf32>
    %28 = arith.maximumf %25, %27 : vector<8x1xf32>
    %29 = arith.subf %25, %28 : vector<8x1xf32>
    %30 = math.exp %29 : vector<8x1xf32>
    %c0_11 = arith.constant 0 : index
    %c0_12 = arith.constant 0 : index
    %31 = vector.load %arg7[%c0_11, %c0_12] : memref<8x1xf32, #tpu.memory_space<vmem>>, vector<8x1xf32>
    %32 = arith.mulf %30, %31 : vector<8x1xf32>
    %33 = vector.broadcast %28 : vector<8x1xf32> to vector<8x128xf32>
    %34 = arith.subf %24, %33 : vector<8x128xf32>
    %35 = math.exp %34 : vector<8x128xf32>
    %cst_13 = arith.constant dense<0.000000e+00> : vector<8xf32>
    %36 = vector.multi_reduction <add>, %35, %cst_13 [1] : vector<8x128xf32> to vector<8xf32>
    %37 = vector.shape_cast %36 : vector<8xf32> to vector<8x1xf32>
    %38 = arith.addf %32, %37 : vector<8x1xf32>
    %c0_14 = arith.constant 0 : index
    %c0_15 = arith.constant 0 : index
    %39 = vector.load %arg7[%c0_14, %c0_15] : memref<8x1xf32, #tpu.memory_space<vmem>>, vector<8x1xf32>
    tpu.vector_store %arg7[%c0_14, %c0_15], %38 {strides = array<i32>} : memref<8x1xf32, #tpu.memory_space<vmem>>, vector<8x1xf32>,
    %c0_16 = arith.constant 0 : index
    %c0_17 = arith.constant 0 : index
    %40 = vector.load %arg6[%c0_16, %c0_17] : memref<8x1xf32, #tpu.memory_space<vmem>>, vector<8x1xf32>
    tpu.vector_store %arg6[%c0_16, %c0_17], %28 {strides = array<i32>} : memref<8x1xf32, #tpu.memory_space<vmem>>, vector<8x1xf32>,
    %c0_i32_18 = arith.constant 0 : i32
    %41 = arith.cmpi eq, %arg1, %c0_i32_18 : i32
    %42 = arith.extui %41 : i1 to i32
    %c0_i32_19 = arith.constant 0 : i32
    %43 = arith.cmpi ne, %42, %c0_i32_19 : i32
    scf.if %43 {
      %c0_20 = arith.constant 0 : index
      %c0_21 = arith.constant 0 : index
      %44 = vector.load %arg6[%c0_20, %c0_21] : memref<8x1xf32, #tpu.memory_space<vmem>>, vector<8x1xf32>
      %c0_22 = arith.constant 0 : index
      %c0_23 = arith.constant 0 : index
      %45 = vector.load %arg7[%c0_22, %c0_23] : memref<8x1xf32, #tpu.memory_space<vmem>>, vector<8x1xf32>
      %46 = math.log %45 : vector<8x1xf32>
      %47 = arith.addf %44, %46 : vector<8x1xf32>
      %c0_24 = arith.constant 0 : index
      %c0_25 = arith.constant 0 : index
      %48 = vector.load %arg8[%c0_24, %c0_25] : memref<8x1xf32, #tpu.memory_space<vmem>>, vector<8x1xf32>
      %49 = arith.subf %47, %48 : vector<8x1xf32>
      %c0_26 = arith.constant 0 : index
      %c0_27 = arith.constant 0 : index
      %50 = vector.load %arg5[%c0_26, %c0_27] : memref<8x1xf32, #tpu.memory_space<vmem>>, vector<8x1xf32>
      tpu.vector_store %arg5[%c0_26, %c0_27], %49 {strides = array<i32>} : memref<8x1xf32, #tpu.memory_space<vmem>>, vector<8x1xf32>,
    } else {
    }
    return
  }
  func.func @transform_0(%arg0: i32, %arg1: i32) -> (i32, i32) {
    %c0_i32 = arith.constant 0 : i32
    %c0_i32_0 = arith.constant 0 : i32
    return %arg0, %c0_i32 : i32, i32
  }
  func.func @transform_1(%arg0: i32, %arg1: i32) -> (i32, i32) {
    %c0_i32 = arith.constant 0 : i32
    %c0_i32_0 = arith.constant 0 : i32
    return %arg0, %c0_i32 : i32, i32
  }
  func.func @transform_2(%arg0: i32, %arg1: i32) -> (i32, i32) {
    %c0_i32 = arith.constant 0 : i32
    %c0_i32_0 = arith.constant 0 : i32
    return %arg1, %c0_i32 : i32, i32
  }
  func.func @transform_3(%arg0: i32, %arg1: i32) -> (i32, i32) {
    %c0_i32 = arith.constant 0 : i32
    %c0_i32_0 = arith.constant 0 : i32
    return %arg0, %c0_i32 : i32, i32
  }
}

</mosaic_0001>

<bundles_post_ra>
// kernel: tpu_custom_call.1
= control target key start
LH: loop header
LB: loop body
LE: loop exit
PB: predicated region body
PF: predicated region fallthrough
CT: control target
= control target key end

     0   :  { %vm25_vm0 = vcmask 261120   ;;  %vm20_vm1 = vcmask 7168   ;;  %v335_v0 = vmov 0.0|0.0   ;;  %v336_v4 = vmov 0.0   ;;  %s447_s2 = inlined_call_operand.vmem [shape: f32[128,32], index: 2, kind: input, shape index: {}]   ;;  %s448_s0 = inlined_call_operand.vmem [shape: f32[8,32], index: 0, kind: input, shape index: {}]   ;;  %s449_s1 = inlined_call_operand.vmem [shape: f32[8,32], index: 1, kind: input, shape index: {}]   ;;  %s450_s3 = inlined_call_operand.vmem [shape: f32[8,1], index: 3, kind: output, shape index: {}]  }
   0x1   :  { %291 = vmatprep.subr.bf16.mxu0 %v335_v0  ;;  %v30_v1 = vld [vmem:[%s447_s2] sm:$0xff]  ;;  %v31_v2 = vld [vmem:[%s447_s2 + $0x8] sm:$0xff]  ;;  %vm368_vm2 = vmpackc.low %vm25_vm0, %vm25_vm0  ;;  %22 = vst.msk [vmem:[#allocation3] sm:$0xff] %vm20_vm1, %v336_v4  ;;  %vm337_vm3 = vmmov 0   ;;  %v338_v29 = vmov -inf   ;;  %v170_v30 = vlaneseq  ;;  %v339_v36 = vmov 0  }
   0x2   :  { %v292_v5 = vpack.c.bf16 %v31_v2, %v30_v1  ;;  %288 = vmatprep.mubr.msk.f32.mxu0 %vm337_vm3, %v336_v4  ;;  %v32_v6 = vld [vmem:[%s447_s2 + $0x10] sm:$0xff]  ;;  %v33_v7 = vld [vmem:[%s447_s2 + $0x18] sm:$0xff]  ;;  %v34_v9 = vld [vmem:[%s447_s2 + $0x20] sm:$0xff]  ;;  %21 = vst.msk [vmem:[#allocation2] sm:$0xff] %vm20_vm1, %v338_v29  ;;  %328 = vset.pattern.permute.xlu0 %v339_v36 }
   0x3   :  { %v296_v8 = vpack.c.bf16 %v33_v7, %v32_v6  ;;  %v35_v10 = vld [vmem:[%s447_s2 + $0x28] sm:$0xff]  ;;  %v36_v12 = vld [vmem:[%s447_s2 + $0x30] sm:$0xff]  ;;  %v37_v13 = vld [vmem:[%s447_s2 + $0x38] sm:$0xff]  ;;  %v171_v31 = vshrl.u32 %v170_v30, 7  ;;  %v175_v32 = vand.u32 127, %v170_v30 }
   0x4   :  { %294 = vmatpush3.bf16.xpose.msk.msra.mxu0 %vm368_vm2, %v292_v5  ;;  %v300_v11 = vpack.c.bf16 %v35_v10, %v34_v9  ;;  %v304_v14 = vpack.c.bf16 %v37_v13, %v36_v12  ;;  %v38_v15 = vld [vmem:[%s447_s2 + $0x40] sm:$0xff]  ;;  %v39_v16 = vld [vmem:[%s447_s2 + $0x48] sm:$0xff]  ;;  %v40_v18 = vld [vmem:[%s447_s2 + $0x50] sm:$0xff] }
   0x5   :  { %295 = vmatprep.subr.bf16.mxu0 %v335_v0  ;;  %v308_v17 = vpack.c.bf16 %v39_v16, %v38_v15  ;;  %v41_v19 = vld [vmem:[%s447_s2 + $0x58] sm:$0xff]  ;;  %v42_v21 = vld [vmem:[%s447_s2 + $0x60] sm:$0xff]  ;;  %v43_v22 = vld [vmem:[%s447_s2 + $0x68] sm:$0xff]  ;;  %vm178_vm4 = vcmp.eq.s32.totalorder %v171_v31, %v175_v32  ;;  %vm179_vm5 = vcmp.lt.s32.totalorder %v175_v32, 8  ;;  %vm181_vm7 = vcmp.ge.s32.totalorder %v175_v32, 8 }
   0x6   :  { %v312_v20 = vpack.c.bf16 %v41_v19, %v40_v18  ;;  %v316_v23 = vpack.c.bf16 %v43_v22, %v42_v21  ;;  %v44_v24 = vld [vmem:[%s447_s2 + $0x70] sm:$0xff]  ;;  %v45_v25 = vld [vmem:[%s447_s2 + $0x78] sm:$0xff]  ;;  %v14_v27 = vld [vmem:[%s448_s0] sm:$0xff] }
   0x7   :  { %v320_v26 = vpack.c.bf16 %v45_v25, %v44_v24  ;;  %v15_v28 = vmul.f32 2.0, %v14_v27  ;;  %vm180_vm6 = vmand %vm178_vm4, %vm179_vm5  ;;  %v23_v44 = vld [vmem:[%s449_s1] sm:$0xff] }
   0x8   :  { %vm182_vm8 = vmor %vm180_vm6, %vm181_vm7  ;;  %v191_v50 = vld [vmem:[#allocation3] sm:$0xff] }
   0x9   :  { %v184_v37 = vld [vmem:[#allocation2] sm:$0xff]  ;;  %v24_v45 = vmul.f32 %v23_v44, %v15_v28 }
   0xb   :  { %v26_v47 = vsel %vm25_vm0, %v24_v45, 0.0 }
   0xc   :  { %298 = vmatpush3.bf16.xpose.msk.msra.mxu0 %vm368_vm2, %v296_v8 }
   0xd   :  { %299 = vmatprep.subr.bf16.mxu0 %v335_v0 }
  0x14   :  { %302 = vmatpush3.bf16.xpose.msk.msra.mxu0 %vm368_vm2, %v300_v11 }
  0x15   :  { %303 = vmatprep.subr.bf16.mxu0 %v335_v0 }
  0x1c   :  { %306 = vmatpush3.bf16.xpose.msk.msra.mxu0 %vm368_vm2, %v304_v14 }
  0x1d   :  { %307 = vmatprep.subr.bf16.mxu0 %v335_v0 }
  0x24   :  { %310 = vmatpush3.bf16.xpose.msk.msra.mxu0 %vm368_vm2, %v308_v17 }
  0x25   :  { %311 = vmatprep.subr.bf16.mxu0 %v335_v0 }
  0x2c   :  { %314 = vmatpush3.bf16.xpose.msk.msra.mxu0 %vm368_vm2, %v312_v20 }
  0x2d   :  { %315 = vmatprep.subr.bf16.mxu0 %v335_v0 }
  0x34   :  { %318 = vmatpush3.bf16.xpose.msk.msra.mxu0 %vm368_vm2, %v316_v23 }
  0x35   :  { %319 = vmatprep.subr.bf16.mxu0 %v335_v0 }
  0x3c   :  { %322 = vmatpush3.bf16.xpose.msk.msra.mxu0 %vm368_vm2, %v320_v26 }
  0x43   :  { %289 = vmatmul.mubr.msk.f32.vlgmr.msra.gmra.mrb[0].mxu0 %vm25_vm0, %v15_v28 }
 0x116   :  { %v164_v33 = vpop.f32.mrb[0].mxu0 }
 0x117   :  { %v290_v34 = vpop.f32.mrb[1].mxu0  ;;  %v183_v35 = vsel %vm182_vm8, -1e+09, %v164_v33 }
 0x118   :  { %185 = vmax.xlane.f32.xlu0 %v183_v35 }
 0x1a5   :  { %v186_v38 = vpop.xlane.xlu0 %185 }
 0x1a6   :  { %v187_v39 = vmax.f32 %v184_v37, %v186_v38 }
 0x1a8   :  { %v188_v40 = vsub.f32 %v184_v37, %v187_v39  ;;  %206 = vst.msk [vmem:[#allocation2] sm:$0xff] %vm20_vm1, %v187_v39  ;;  %195 = vperm.xlu0 %328, %v187_v39  }
 0x1aa   :  { %v189_v48 = vmul.f32 1.442695, %v188_v40 }
 0x1af   :  { %v210_v58 = vld [vmem:[#allocation2] sm:$0xff] }
 0x227   :  { %v196_v41 = vpop.permute.xlu0 %195 }
 0x228   :  { %v198_v42 = vsub.f32 %v183_v35, %v196_v41 }
 0x22a   :  { %v199_v43 = vmul.f32 1.442695, %v198_v42 }
 0x22c   :  { %329 = vpow2.f32 %v199_v43 }
 0x22d   :  { %331 = vpow2.f32 %v189_v48 }
 0x236   :  { %v330_v46 = vpop.eup %329 }
 0x237   :  { %201 = vadd.xlane.f32.xlu1 %v330_v46  ;;  %v332_v49 = vpop.eup %331 }
 0x238   :  { %v192_v51 = vmul.f32 %v332_v49, %v191_v50 }
 0x23b   :  { %27 = vadd.xlane.f32.xlu1 %v26_v47 }
 0x2c4   :  { %v202_v52 = vpop.xlane.xlu1 %201 }
 0x2c5   :  { %v203_v53 = vadd.f32 %v202_v52, %v192_v51 }
 0x2c7   :  { %205 = vst.msk [vmem:[#allocation3] sm:$0xff] %vm20_vm1, %v203_v53 }
 0x2c8   :  { %v28_v54 = vpop.xlane.xlu1 %27 }
 0x2c9   :  { %29 = vst.msk [vmem:[#allocation4] sm:$0xff] %vm20_vm1, %v28_v54 }
 0x2ce   :  { %v211_v55 = vld [vmem:[#allocation3] sm:$0xff] }
 0x2cf   :  { %333 = vlog2.f32 %v211_v55 }
 0x2d0   :  { %v215_v59 = vld [vmem:[#allocation4] sm:$0xff] }
 0x2d9   :  { %v334_v56 = vpop.eup %333 }
 0x2da   :  { %v213_v57 = vmul.f32 0.6931472, %v334_v56 }
 0x2dc   :  { %v214_v60 = vadd.f32 %v213_v57, %v210_v58 }
 0x2de   :  { %v216_v61 = vsub.f32 %v214_v60, %v215_v59 }
 0x2e0   :  { %217 = vst.msk [vmem:[%s450_s3] sm:$0xff] %vm20_vm1, %v216_v61 }

</bundles_post_ra>
